<compile_context>
chip_gen: v6e
topology: v6e:2x2x1
jax: 0.10.0
libtpu: 0.0.40
codegen_flags: <defaults>
</compile_context>

<pallas_src>
import jax
import jax.numpy as jnp
from jax.experimental import pallas as pl
from jax.experimental.pallas import tpu as pltpu

IN_PAD = 8      # padded input-feature width (7 -> 8): narrow, contiguous x tiles
HID_PAD = 128   # padded hidden width (20 -> 128): lane-dense MXU tiles, VMEM-only
OUT_PAD = 8     # padded output width (2 -> 8): narrow writeback
TB_TARGET = 4096  # target batch rows per grid step (multiple of 8)


def _mlp_kernel(x_ref, w1_ref, b1_ref, w2_ref, b2_ref, w3_ref, b3_ref, o_ref):
    # Layer 1: (TB, 8) @ (8, 128) + b1, ReLU
    h1 = jnp.dot(x_ref[...], w1_ref[...], preferred_element_type=jnp.float32)
    h1 = jnp.maximum(h1 + b1_ref[...], 0.0)
    # Layer 2: (TB, 128) @ (128, 128) + b2, ReLU
    h2 = jnp.dot(h1, w2_ref[...], preferred_element_type=jnp.float32)
    h2 = jnp.maximum(h2 + b2_ref[...], 0.0)
    # Output layer: (TB, 128) @ (128, 8) + b3 (no activation); padded cols are inert.
    out = jnp.dot(h2, w3_ref[...], preferred_element_type=jnp.float32)
    o_ref[...] = (out + b3_ref[...]).astype(o_ref.dtype)


def _round_up(n, m):
    return ((n + m - 1) // m) * m


def _pad2d(a, rows, cols):
    return jnp.pad(a, ((0, rows - a.shape[0]), (0, cols - a.shape[1])))


def init_params(key, input_feature=7, hidden1=20, hidden2=20, out_features=2):
    """Deterministic init mirroring nn.Linear fan-in bounds; stored transposed for x @ W."""
    ks = jax.random.split(key, 6)

    def lin(kw, kb, fan_in, fan_out):
        bound = 1.0 / jnp.sqrt(fan_in)
        w = jax.random.uniform(kw, (fan_in, fan_out), jnp.float32, -bound, bound)
        b = jax.random.uniform(kb, (1, fan_out), jnp.float32, -bound, bound)
        return w, b

    w1, b1 = lin(ks[0], ks[1], input_feature, hidden1)
    w2, b2 = lin(ks[2], ks[3], hidden1, hidden2)
    w3, b3 = lin(ks[4], ks[5], hidden2, out_features)
    return {"w1": w1, "b1": b1, "w2": w2, "b2": b2, "w3": w3, "b3": b3}


def prepare_params(params):
    """One-time zero-padding: w1 (7,20)->(8,128), w2 (20,20)->(128,128), w3 (20,2)->(128,8).

    Zero-padded rows/cols are numerically inert (ReLU(0 + 0) = 0), so the padded
    network computes exactly the same logits in its first `out_features` columns.
    """
    return {
        "w1": _pad2d(params["w1"], IN_PAD, HID_PAD),
        "b1": _pad2d(params["b1"], 1, HID_PAD),
        "w2": _pad2d(params["w2"], HID_PAD, HID_PAD),
        "b2": _pad2d(params["b2"], 1, HID_PAD),
        "w3": _pad2d(params["w3"], HID_PAD, OUT_PAD),
        "b3": _pad2d(params["b3"], 1, OUT_PAD),
    }


def _choose_tiling(B):
    """Balanced batch tiling: minimal padding, >=2 grid steps when possible (v7x megacore)."""
    b8 = _round_up(max(B, 8), 8)
    n_steps = pl.cdiv(b8, TB_TARGET)
    if b8 >= 16:
        n_steps = max(n_steps, 2)       # keep both TensorCores busy on v7x
    tb = _round_up(pl.cdiv(b8, n_steps), 8)
    b_pad = tb * n_steps
    return tb, n_steps, b_pad


def ann_model_forward(x, padded_params, out_features=2):
    """x: (B, input_feature) f32. padded_params: output of prepare_params()."""
    B, in_f = x.shape
    tb, n_steps, b_pad = _choose_tiling(B)

    # Pad x once in the wrapper: zero feature columns / zero batch rows are inert & sliced off.
    x_p = jnp.pad(x, ((0, b_pad - B), (0, IN_PAD - in_f)))

    x_spec = pl.BlockSpec((tb, IN_PAD), lambda i: (i, 0))      # narrow, contiguous reads
    w1_spec = pl.BlockSpec((IN_PAD, HID_PAD), lambda i: (0, 0))   # resident across steps
    b1_spec = pl.BlockSpec((1, HID_PAD), lambda i: (0, 0))
    w2_spec = pl.BlockSpec((HID_PAD, HID_PAD), lambda i: (0, 0))
    b2_spec = pl.BlockSpec((1, HID_PAD), lambda i: (0, 0))
    w3_spec = pl.BlockSpec((HID_PAD, OUT_PAD), lambda i: (0, 0))
    b3_spec = pl.BlockSpec((1, OUT_PAD), lambda i: (0, 0))
    out_spec = pl.BlockSpec((tb, OUT_PAD), lambda i: (i, 0))   # narrow writeback

    flops = 2 * b_pad * (IN_PAD * HID_PAD + HID_PAD * HID_PAD + HID_PAD * OUT_PAD)
    bytes_accessed = 4 * (
        b_pad * IN_PAD + b_pad * OUT_PAD
        + IN_PAD * HID_PAD + HID_PAD
        + HID_PAD * HID_PAD + HID_PAD
        + HID_PAD * OUT_PAD + OUT_PAD
    )

    out_padded = pl.pallas_call(
        _mlp_kernel,
        out_shape=jax.ShapeDtypeStruct((b_pad, OUT_PAD), jnp.float32),
        grid=(n_steps,),
        in_specs=[x_spec, w1_spec, b1_spec, w2_spec, b2_spec, w3_spec, b3_spec],
        out_specs=out_spec,
        compiler_params=pltpu.CompilerParams(
            dimension_semantics=("parallel",),  # shard batch tiles across TCs (v7x megacore)
        ),
        cost_estimate=pl.CostEstimate(
            flops=flops, transcendentals=0, bytes_accessed=bytes_accessed),
    )(x_p, padded_params["w1"], padded_params["b1"],
      padded_params["w2"], padded_params["b2"],
      padded_params["w3"], padded_params["b3"])

    return out_padded[:B, :out_features]


def _reference(x, p):
    h1 = jnp.maximum(x @ p["w1"] + p["b1"], 0.0)
    h2 = jnp.maximum(h1 @ p["w2"] + p["b2"], 0.0)
    return h2 @ p["w3"] + p["b3"]


if __name__ == "__main__":
    key = jax.random.PRNGKey(0)
    k_x, k_p, k_x2 = jax.random.split(key, 3)

    input_feature, out_features = 7, 2
    params = init_params(k_p, input_feature=input_feature, hidden1=20, hidden2=20,
                         out_features=out_features)
    padded_params = prepare_params(params)  # pad once, not per call

    # Small test (single grid step).
    batch = 8
    x = jax.random.normal(k_x, (batch, input_feature), dtype=jnp.float32)
    out = ann_model_forward(x, padded_params, out_features=out_features)
    out = jax.block_until_ready(out)
    ref = _reference(x, params)
    assert out.shape == (batch, out_features)
    assert jnp.allclose(out, ref, atol=1e-5, rtol=1e-5)

    # Larger, unlucky batch size (exercises balanced multi-step grid + megacore path).
    batch2 = 520
    x2 = jax.random.normal(k_x2, (batch2, input_feature), dtype=jnp.float32)
    out2 = jax.block_until_ready(ann_model_forward(x2, padded_params, out_features=out_features))
    ref2 = _reference(x2, params)
    assert out2.shape == (batch2, out_features)
    assert jnp.allclose(out2, ref2, atol=1e-5, rtol=1e-5)

    print("KERNEL_OK")
</pallas_src>

<mosaic_0001>
module attributes {stable_mosaic.version = 11 : i64} {
  func.func @_mlp_kernel(%arg0: i32, %arg1: memref<8x8xf32, #tpu.memory_space<vmem>>, %arg2: memref<8x128xf32, #tpu.memory_space<vmem>>, %arg3: memref<1x128xf32, #tpu.memory_space<vmem>>, %arg4: memref<128x128xf32, #tpu.memory_space<vmem>>, %arg5: memref<1x128xf32, #tpu.memory_space<vmem>>, %arg6: memref<128x8xf32, #tpu.memory_space<vmem>>, %arg7: memref<1x8xf32, #tpu.memory_space<vmem>>, %arg8: memref<8x8xf32, #tpu.memory_space<vmem>>) attributes {dimension_semantics = [#tpu.dimension_semantics<parallel>], iteration_bounds = array<i64: 1>, scalar_prefetch = 0 : i64, scratch_operands = 0 : i64, tpu.core_type = #tpu.core_type<tc>, window_params = [{transform_indices = @transform_0, window_bounds = array<i64: 8, 8>}, {pipeline_mode = #tpu.pipeline_mode<synchronous>, transform_indices = @transform_1, window_bounds = array<i64: 8, 128>}, {pipeline_mode = #tpu.pipeline_mode<synchronous>, transform_indices = @transform_2, window_bounds = array<i64: 1, 128>}, {pipeline_mode = #tpu.pipeline_mode<synchronous>, transform_indices = @transform_3, window_bounds = array<i64: 128, 128>}, {pipeline_mode = #tpu.pipeline_mode<synchronous>, transform_indices = @transform_4, window_bounds = array<i64: 1, 128>}, {pipeline_mode = #tpu.pipeline_mode<synchronous>, transform_indices = @transform_5, window_bounds = array<i64: 128, 8>}, {pipeline_mode = #tpu.pipeline_mode<synchronous>, transform_indices = @transform_6, window_bounds = array<i64: 1, 8>}, {transform_indices = @transform_7, window_bounds = array<i64: 8, 8>}]} {
    %c0 = arith.constant 0 : index
    %c0_0 = arith.constant 0 : index
    %0 = vector.load %arg1[%c0, %c0_0] : memref<8x8xf32, #tpu.memory_space<vmem>>, vector<8x8xf32>
    %c0_1 = arith.constant 0 : index
    %c0_2 = arith.constant 0 : index
    %1 = vector.load %arg2[%c0_1, %c0_2] : memref<8x128xf32, #tpu.memory_space<vmem>>, vector<8x128xf32>
    %cst = arith.constant dense<0.000000e+00> : vector<8x128xf32>
    %2 = tpu.matmul %0, %1, %cst {dimension_numbers = #tpu.dot_dimension_numbers<[1], [0], [0], [1], [0, 0, 1, 1], [], []>} : vector<8x8xf32>, vector<8x128xf32>, vector<8x128xf32> -> vector<8x128xf32>
    %c0_3 = arith.constant 0 : index
    %c0_4 = arith.constant 0 : index
    %3 = vector.load %arg3[%c0_3, %c0_4] : memref<1x128xf32, #tpu.memory_space<vmem>>, vector<1x128xf32>
    %4 = vector.broadcast %3 : vector<1x128xf32> to vector<8x128xf32>
    %5 = arith.addf %2, %4 : vector<8x128xf32>
    %cst_5 = arith.constant 0.000000e+00 : f32
    %6 = vector.broadcast %cst_5 : f32 to vector<8x128xf32>
    %7 = arith.maximumf %5, %6 : vector<8x128xf32>
    %c0_6 = arith.constant 0 : index
    %c0_7 = arith.constant 0 : index
    %8 = vector.load %arg4[%c0_6, %c0_7] : memref<128x128xf32, #tpu.memory_space<vmem>>, vector<128x128xf32>
    %cst_8 = arith.constant dense<0.000000e+00> : vector<8x128xf32>
    %9 = tpu.matmul %7, %8, %cst_8 {dimension_numbers = #tpu.dot_dimension_numbers<[1], [0], [0], [1], [0, 0, 1, 1], [], []>} : vector<8x128xf32>, vector<128x128xf32>, vector<8x128xf32> -> vector<8x128xf32>
    %c0_9 = arith.constant 0 : index
    %c0_10 = arith.constant 0 : index
    %10 = vector.load %arg5[%c0_9, %c0_10] : memref<1x128xf32, #tpu.memory_space<vmem>>, vector<1x128xf32>
    %11 = vector.broadcast %10 : vector<1x128xf32> to vector<8x128xf32>
    %12 = arith.addf %9, %11 : vector<8x128xf32>
    %cst_11 = arith.constant 0.000000e+00 : f32
    %13 = vector.broadcast %cst_11 : f32 to vector<8x128xf32>
    %14 = arith.maximumf %12, %13 : vector<8x128xf32>
    %c0_12 = arith.constant 0 : index
    %c0_13 = arith.constant 0 : index
    %15 = vector.load %arg6[%c0_12, %c0_13] : memref<128x8xf32, #tpu.memory_space<vmem>>, vector<128x8xf32>
    %cst_14 = arith.constant dense<0.000000e+00> : vector<8x8xf32>
    %16 = tpu.matmul %14, %15, %cst_14 {dimension_numbers = #tpu.dot_dimension_numbers<[1], [0], [0], [1], [0, 0, 1, 1], [], []>} : vector<8x128xf32>, vector<128x8xf32>, vector<8x8xf32> -> vector<8x8xf32>
    %c0_15 = arith.constant 0 : index
    %c0_16 = arith.constant 0 : index
    %17 = vector.load %arg7[%c0_15, %c0_16] : memref<1x8xf32, #tpu.memory_space<vmem>>, vector<1x8xf32>
    %18 = vector.broadcast %17 : vector<1x8xf32> to vector<8x8xf32>
    %19 = arith.addf %16, %18 : vector<8x8xf32>
    %c0_17 = arith.constant 0 : index
    %c0_18 = arith.constant 0 : index
    %20 = vector.load %arg8[%c0_17, %c0_18] : memref<8x8xf32, #tpu.memory_space<vmem>>, vector<8x8xf32>
    tpu.vector_store %arg8[%c0_17, %c0_18], %19 {strides = array<i32>} : memref<8x8xf32, #tpu.memory_space<vmem>>, vector<8x8xf32>,
    return
  }
  func.func @transform_0(%arg0: i32) -> (i32, i32) {
    %c0_i32 = arith.constant 0 : i32
    %c0_i32_0 = arith.constant 0 : i32
    return %arg0, %c0_i32 : i32, i32
  }
  func.func @transform_1(%arg0: i32) -> (i32, i32) {
    %c0_i32 = arith.constant 0 : i32
    %c0_i32_0 = arith.constant 0 : i32
    %c0_i32_1 = arith.constant 0 : i32
    return %c0_i32, %c0_i32_0 : i32, i32
  }
  func.func @transform_2(%arg0: i32) -> (i32, i32) {
    %c0_i32 = arith.constant 0 : i32
    %c0_i32_0 = arith.constant 0 : i32
    %c0_i32_1 = arith.constant 0 : i32
    return %c0_i32, %c0_i32_0 : i32, i32
  }
  func.func @transform_3(%arg0: i32) -> (i32, i32) {
    %c0_i32 = arith.constant 0 : i32
    %c0_i32_0 = arith.constant 0 : i32
    %c0_i32_1 = arith.constant 0 : i32
    return %c0_i32, %c0_i32_0 : i32, i32
  }
  func.func @transform_4(%arg0: i32) -> (i32, i32) {
    %c0_i32 = arith.constant 0 : i32
    %c0_i32_0 = arith.constant 0 : i32
    %c0_i32_1 = arith.constant 0 : i32
    return %c0_i32, %c0_i32_0 : i32, i32
  }
  func.func @transform_5(%arg0: i32) -> (i32, i32) {
    %c0_i32 = arith.constant 0 : i32
    %c0_i32_0 = arith.constant 0 : i32
    %c0_i32_1 = arith.constant 0 : i32
    return %c0_i32, %c0_i32_0 : i32, i32
  }
  func.func @transform_6(%arg0: i32) -> (i32, i32) {
    %c0_i32 = arith.constant 0 : i32
    %c0_i32_0 = arith.constant 0 : i32
    %c0_i32_1 = arith.constant 0 : i32
    return %c0_i32, %c0_i32_0 : i32, i32
  }
  func.func @transform_7(%arg0: i32) -> (i32, i32) {
    %c0_i32 = arith.constant 0 : i32
    %c0_i32_0 = arith.constant 0 : i32
    return %arg0, %c0_i32 : i32, i32
  }
}

</mosaic_0001>

<bundles_post_ra>
// kernel: tpu_custom_call.1
= control target key start
LH: loop header
LB: loop body
LE: loop exit
PB: predicated region body
PF: predicated region fallthrough
CT: control target
= control target key end

     0   :  { %12 = vsyncpa [#allocation3], 0  ;;  %s725_s0 = inlined_call_operand.vmem [shape: f32[8,8], index: 0, kind: input, shape index: {}]   ;;  %s726_s1 = inlined_call_operand.hbm [shape: f32[8,128], index: 1, kind: input, shape index: {}]   ;;  %s727_s2 = inlined_call_operand.vmem [shape: f32[1,128], index: 2, kind: input, shape index: {}]   ;;  %s728_s3 = inlined_call_operand.vmem [shape: f32[128,128], index: 3, kind: input, shape index: {}]   ;;  %s729_s4 = inlined_call_operand.hbm [shape: f32[1,128], index: 4, kind: input, shape index: {}]   ;;  %s730_s5 = inlined_call_operand.vmem [shape: f32[128,8], index: 5, kind: input, shape index: {}]   ;;  %s731_s6 = inlined_call_operand.vmem [shape: f32[1,8], index: 6, kind: input, shape index: {}]   ;;  %s732_s7 = inlined_call_operand.hbm [shape: f32[8,8], index: 7, kind: output, shape index: {}]  }
   0x1   :  { %13 = vsyncpa [#allocation6], 0 }
   0x2   :  { %14 = vsyncpa [#allocation4], 0  ;;  %s525_s24 = smov [#allocation2]   ;;  %s526_s26 = smov [#allocation5]  }
   0x3   :  { %s23_s25 = sshll.u32 %s525_s24, 4  ;;  %s37_s27 = sshll.u32 %s526_s26, 4  ;;  %s24_s25 = int_to_ptr.vmem [resolvable:$true] %s23_s25  ;;  %s38_s27 = int_to_ptr.vmem [resolvable:$true] %s37_s27 }
   0x4   :  { %s467_s28 = scalar_lea.vmem %s24_s25, 128  ;;  %p472_p1 = scmp.lt.s32.totalorder %s24_s25, %s24_s25 }
   0x5   :  { %p468_p0 = scmp.ne.s32.totalorder %s24_s25, %s467_s28  ;;  %p473_p2 = scmp.lt.s32.totalorder %s467_s28, %s467_s28 }
   0x7   :  { %p474_p3 = por %p473_p2, %p472_p1 }
   0x9   :  { %p475_p4 = pnand %p474_p3, %p468_p0 }
   0xb   :  { %478 = shalt.err (!%p475_p4)
}
   0xc   :  { %26 = dma.hbm_to_vmem [thread:$0]  %s726_s1, 128, %s24_s25, [#allocation3]  }
   0xd   :  { %s487_s8 = scalar_lea.vmem %s38_s27, 16  ;;  %s491_s9 = scalar_lea.vmem %s38_s27, 32 }
   0xe   :  { %p488_p5 = scmp.ne.s32.totalorder %s38_s27, %s487_s8  ;;  %p492_p6 = scmp.lt.s32.totalorder %s38_s27, %s38_s27 }
   0xf   :  { %p493_p7 = scmp.lt.s32.totalorder %s491_s9, %s487_s8 }
  0x11   :  { %p494_p8 = por %p493_p7, %p492_p6 }
  0x13   :  { %p495_p9 = pnand %p494_p8, %p488_p5 }
  0x15   :  { %498 = shalt.err (!%p495_p9)
}
  0x16   :  { %40 = dma.hbm_to_vmem [thread:$0]  %s729_s4, 16, %s38_s27, [#allocation6]  }
  0x17   :  { %519 = dma.done.wait [#allocation3], 128  }
  0x18   :  { %520 = vsyncadd [#allocation3], 4294967168 }
  0x19   :  { %521 = dma.done.wait [#allocation6], 16  }
  0x1a   :  { %522 = vsyncadd [#allocation6], 4294967280  ;;  %v527_v0 = vmov 0.0   ;;  %vm528_vm0 = vmmov 0   ;;  %vm60_vm1 = vcmask 64512   ;;  %v52_v1 = vld [vmem:[#allocation2] sm:$0xff] }
  0x1b   :  { %379 = vmatprep.subr.mxu0 %v527_v0  ;;  %381 = vmatprep.mubr.msk.f32.mxu0 %vm528_vm0, %v527_v0  ;;  %v51_v2 = vld [vmem:[%s725_s0] sm:$0xff]  ;;  %v150_v3 = vld [vmem:[%s728_s3 + $0x78] sm:$0xff]  ;;  %v149_v4 = vld [vmem:[%s728_s3 + $0x70] sm:$0xff]  ;;  %s529_s24 = smov [#allocation7]  }
  0x1c   :  { %384 = vmatprep.subr.mxu1 %v527_v0  ;;  %416 = vmatprep.mubr.msk.f32.mxu1 %vm528_vm0, %v527_v0  ;;  %v148_v5 = vld [vmem:[%s728_s3 + $0x68] sm:$0xff]  ;;  %v147_v6 = vld [vmem:[%s728_s3 + $0x60] sm:$0xff]  ;;  %v146_v7 = vld [vmem:[%s728_s3 + $0x58] sm:$0xff]  ;;  %s329_s25 = sshll.u32 %s529_s24, 4  ;;  %s330_s25 = int_to_ptr.vmem [resolvable:$true] %s329_s25 }
  0x1d   :  { %380 = vmatpush3.msra.mxu0 %v52_v1  ;;  %385 = vmatpush3.msra.mxu1 %v150_v3  ;;  %v145_v8 = vld [vmem:[%s728_s3 + $0x50] sm:$0xff]  ;;  %v144_v9 = vld [vmem:[%s728_s3 + $0x48] sm:$0xff]  ;;  %v143_v10 = vld [vmem:[%s728_s3 + $0x40] sm:$0xff]  ;;  %p504_p11 = scmp.lt.s32.totalorder %s330_s25, %s330_s25 }
  0x1e   :  { %382 = vmatmul.mubr.msk.f32.vlgmr.msra.gmra.mxu0 %vm60_vm1, %v51_v2  ;;  %386 = vmatprep.subr.mxu1 %v527_v0  ;;  %v142_v11 = vld [vmem:[%s728_s3 + $0x38] sm:$0xff]  ;;  %v141_v12 = vld [vmem:[%s728_s3 + $0x30] sm:$0xff]  ;;  %v140_v13 = vld [vmem:[%s728_s3 + $0x28] sm:$0xff] }
  0x1f   :  { %387 = vmatpush3.msra.mxu1 %v149_v4  ;;  %419 = vmatprep.subr.mxu0 %v527_v0  ;;  %v139_v14 = vld [vmem:[%s728_s3 + $0x20] sm:$0xff]  ;;  %v138_v15 = vld [vmem:[%s728_s3 + $0x18] sm:$0xff]  ;;  %v137_v16 = vld [vmem:[%s728_s3 + $0x10] sm:$0xff] }
  0x20   :  { %388 = vmatprep.subr.mxu1 %v527_v0  ;;  %451 = vmatprep.mubr.msk.f32.mxu0 %vm528_vm0, %v527_v0  ;;  %v136_v17 = vld [vmem:[%s728_s3 + $0x8] sm:$0xff]  ;;  %v135_v18 = vld [vmem:[%s728_s3] sm:$0xff]  ;;  %v244_v19 = vld [vmem:[%s730_s5 + $0x78] sm:$0xff] }
  0x21   :  { %389 = vmatpush3.msra.mxu1 %v148_v5  ;;  %v243_v20 = vld [vmem:[%s730_s5 + $0x70] sm:$0xff]  ;;  %420 = vmatpush3.msra.mxu0 %v244_v19  ;;  %v242_v21 = vld [vmem:[%s730_s5 + $0x68] sm:$0xff]  ;;  %v241_v22 = vld [vmem:[%s730_s5 + $0x60] sm:$0xff] }
  0x22   :  { %390 = vmatprep.subr.mxu1 %v527_v0  ;;  %421 = vmatprep.subr.mxu0 %v527_v0  ;;  %v240_v23 = vld [vmem:[%s730_s5 + $0x58] sm:$0xff]  ;;  %v239_v24 = vld [vmem:[%s730_s5 + $0x50] sm:$0xff]  ;;  %v238_v25 = vld [vmem:[%s730_s5 + $0x48] sm:$0xff] }
  0x23   :  { %391 = vmatpush3.msra.mxu1 %v147_v6  ;;  %422 = vmatpush3.msra.mxu0 %v243_v20  ;;  %v237_v26 = vld [vmem:[%s730_s5 + $0x40] sm:$0xff]  ;;  %v236_v27 = vld [vmem:[%s730_s5 + $0x38] sm:$0xff]  ;;  %v235_v28 = vld [vmem:[%s730_s5 + $0x30] sm:$0xff] }
  0x24   :  { %392 = vmatprep.subr.mxu1 %v527_v0  ;;  %423 = vmatprep.subr.mxu0 %v527_v0  ;;  %v234_v29 = vld [vmem:[%s730_s5 + $0x28] sm:$0xff]  ;;  %v233_v30 = vld [vmem:[%s730_s5 + $0x20] sm:$0xff]  ;;  %v232_v31 = vld [vmem:[%s730_s5 + $0x18] sm:$0xff] }
  0x25   :  { %393 = vmatpush3.msra.mxu1 %v146_v7  ;;  %424 = vmatpush3.msra.mxu0 %v242_v21  ;;  %v339_v32 = vld [vmem:[%s727_s2] ss:$0 sm:$0xff]  ;;  %v231_v37 = vld [vmem:[%s730_s5 + $0x10] sm:$0xff]  ;;  %v230_v38 = vld [vmem:[%s730_s5 + $0x8] sm:$0xff] }
  0x26   :  { %394 = vmatprep.subr.mxu1 %v527_v0  ;;  %425 = vmatprep.subr.mxu0 %v527_v0  ;;  %v229_v39 = vld [vmem:[%s730_s5] sm:$0xff]  ;;  %v341_v40 = vld [vmem:[#allocation5] ss:$0 sm:$0xff]  ;;  %s499_s5 = scalar_lea.vmem %s330_s25, 128 }
  0x27   :  { %395 = vmatpush3.msra.mxu1 %v145_v8  ;;  %426 = vmatpush3.msra.mxu0 %v241_v22  ;;  %v342_v45 = vld [vmem:[%s731_s6] ss:$0 sm:$0xff]  ;;  %p500_p10 = scmp.ne.s32.totalorder %s330_s25, %s499_s5  ;;  %p505_p12 = scmp.lt.s32.totalorder %s499_s5, %s499_s5 }
  0x28   :  { %396 = vmatprep.subr.mxu1 %v527_v0  ;;  %427 = vmatprep.subr.mxu0 %v527_v0 }
  0x29   :  { %397 = vmatpush3.msra.mxu1 %v144_v9  ;;  %428 = vmatpush3.msra.mxu0 %v240_v23  ;;  %p506_p13 = por %p505_p12, %p504_p11 }
  0x2a   :  { %398 = vmatprep.subr.mxu1 %v527_v0  ;;  %429 = vmatprep.subr.mxu0 %v527_v0 }
  0x2b   :  { %399 = vmatpush3.msra.mxu1 %v143_v10  ;;  %430 = vmatpush3.msra.mxu0 %v239_v24  ;;  %p507_p0 = pnand %p506_p13, %p500_p10 }
  0x2c   :  { %400 = vmatprep.subr.mxu1 %v527_v0  ;;  %431 = vmatprep.subr.mxu0 %v527_v0 }
  0x2d   :  { %401 = vmatpush3.msra.mxu1 %v142_v11  ;;  %432 = vmatpush3.msra.mxu0 %v238_v25 }
  0x2e   :  { %402 = vmatprep.subr.mxu1 %v527_v0  ;;  %433 = vmatprep.subr.mxu0 %v527_v0 }
  0x2f   :  { %403 = vmatpush3.msra.mxu1 %v141_v12  ;;  %434 = vmatpush3.msra.mxu0 %v237_v26 }
  0x30   :  { %404 = vmatprep.subr.mxu1 %v527_v0  ;;  %435 = vmatprep.subr.mxu0 %v527_v0 }
  0x31   :  { %405 = vmatpush3.msra.mxu1 %v140_v13  ;;  %436 = vmatpush3.msra.mxu0 %v236_v27 }
  0x32   :  { %406 = vmatprep.subr.mxu1 %v527_v0  ;;  %437 = vmatprep.subr.mxu0 %v527_v0 }
  0x33   :  { %407 = vmatpush3.msra.mxu1 %v139_v14  ;;  %438 = vmatpush3.msra.mxu0 %v235_v28 }
  0x34   :  { %408 = vmatprep.subr.mxu1 %v527_v0  ;;  %439 = vmatprep.subr.mxu0 %v527_v0 }
  0x35   :  { %409 = vmatpush3.msra.mxu1 %v138_v15  ;;  %440 = vmatpush3.msra.mxu0 %v234_v29 }
  0x36   :  { %410 = vmatprep.subr.mxu1 %v527_v0  ;;  %441 = vmatprep.subr.mxu0 %v527_v0 }
  0x37   :  { %411 = vmatpush3.msra.mxu1 %v137_v16  ;;  %442 = vmatpush3.msra.mxu0 %v233_v30 }
  0x38   :  { %412 = vmatprep.subr.mxu1 %v527_v0  ;;  %443 = vmatprep.subr.mxu0 %v527_v0 }
  0x39   :  { %413 = vmatpush3.msra.mxu1 %v136_v17  ;;  %444 = vmatpush3.msra.mxu0 %v232_v31 }
  0x3a   :  { %414 = vmatprep.subr.mxu1 %v527_v0  ;;  %445 = vmatprep.subr.mxu0 %v527_v0 }
  0x3b   :  { %415 = vmatpush3.msra.mxu1 %v135_v18  ;;  %446 = vmatpush3.msra.mxu0 %v231_v37 }
  0x3c   :  { %447 = vmatprep.subr.mxu0 %v527_v0 }
  0x3d   :  { %448 = vmatpush3.msra.mxu0 %v230_v38 }
  0x3e   :  { %449 = vmatprep.subr.mxu0 %v527_v0 }
  0x3f   :  { %450 = vmatpush3.msra.mxu0 %v229_v39 }
  0xde   :  { %v130_v33 = vpop.f32.mrf.mxu0 }
  0xdf   :  { %v131_v34 = vadd.f32 %v339_v32, %v130_v33 }
  0xe0   :  { %v383_v35 = vpop.f32.mrf.mxu0 }
  0xe1   :  { %v134_v36 = vmax.f32 %v131_v34, 0.0 }
  0xe3   :  { %417 = vmatmul.mubr.f32.vlgmr.msra.gmra.mxu1 %v134_v36 }
 0x1a3   :  { %v224_v41 = vpop.f32.mrf.mxu1 }
 0x1a4   :  { %v225_v42 = vadd.f32 %v341_v40, %v224_v41 }
 0x1a5   :  { %v418_v43 = vpop.f32.mrf.mxu1 }
 0x1a6   :  { %v228_v44 = vmax.f32 %v225_v42, 0.0 }
 0x1a8   :  { %452 = vmatmul.mubr.f32.vlgmr.msra.gmra.mxu0 %v228_v44 }
 0x268   :  { %v318_v46 = vpop.f32.mrf.mxu0 }
 0x269   :  { %v319_v47 = vadd.f32 %v342_v45, %v318_v46 }
 0x26a   :  { %v453_v48 = vpop.f32.mrf.mxu0 }
 0x26b   :  { %322 = vst.msk [vmem:[#allocation7] sm:$0xff] %vm60_vm1, %v319_v47 }
 0x26c   :  { %510 = shalt.err (!%p507_p0)
}
 0x26d   :  { %332 = dma.vmem_to_hbm [thread:$0]  %s330_s25, 128, %s732_s7, [#allocation4]  }
 0x26e   :  { %523 = dma.done.wait [#allocation4], 128  }
 0x26f   :  { %524 = vsyncadd [#allocation4], 4294967168 }
 0x270   :  { %336 = vsyncpa [#allocation3], 1 }
 0x271   :  { %337 = vsyncpa [#allocation6], 1 }
 0x272   :  { %338 = vsyncpa [#allocation4], 1 }

</bundles_post_ra>
